<compile_context>
chip_gen: v6e
topology: v6e:2x2x1
jax: 0.10.0
libtpu: 0.0.40
codegen_flags: <defaults>
</compile_context>

<pallas_src>
import math
from functools import partial

import jax
import jax.numpy as jnp
from jax.experimental import pallas as pl
from jax.experimental.pallas import tpu as pltpu


def _round_up(v, m):
    return ((v + m - 1) // m) * m


_VMEM_CAP_CACHE = None


def _vmem_capacity_bytes():
    """Physical VMEM per TensorCore (v5e/v6e: 128 MiB, v7x: 64 MiB)."""
    global _VMEM_CAP_CACHE
    if _VMEM_CAP_CACHE is None:
        cap = None
        try:
            cap = getattr(pltpu.get_tpu_info(), "vmem_capacity_bytes", None)
        except Exception:
            cap = None
        _VMEM_CAP_CACHE = int(cap) if cap else (64 << 20)  # conservative (v7x)
    return _VMEM_CAP_CACHE


def _choose_tiles(n, tm_target, tk_target):
    """Pick (tm, tk, n_pad) with tm | n_pad, tk | n_pad and tk a multiple of tm.

    Prefers padding N up to a tile multiple over shrinking tiles (per-grid-step
    overhead amortization), capping the padding at ~N/8 extra rows. Guarantees
    at least two row tiles when N >= 256 (v7x megacore).
    """
    n128 = _round_up(max(n, 1), 128)
    pad_budget = n128 // 8

    tm = min(_round_up(tm_target, 128), n128)
    if n128 >= 256:
        tm = min(tm, max(((n128 // 2) // 128) * 128, 128))
    tm = max(tm, 128)

    tk = max((min(_round_up(tk_target, 128), n128) // tm) * tm, tm)
    while tk > tm and _round_up(n128, tk) - n128 > pad_budget:
        tk -= tm
    if _round_up(n128, tk) - n128 > pad_budget:
        # Awkward N: guaranteed-divisible fallback (no extra padding).
        return 128, 128, n128
    return tm, tk, _round_up(n128, tk)


# ---------------------------------------------------------------------------
# Kernel 1: feature projection  xw = x @ W   (O(N*F_in*F_out) -- cheap side)
# ---------------------------------------------------------------------------
def _proj_kernel(x_ref, w_ref, o_ref):
    o_ref[...] = jnp.dot(
        x_ref[...], w_ref[...], preferred_element_type=jnp.float32
    ).astype(o_ref.dtype)


def _project(x_p, w_p, *, tm, out_dtype):
    n_pad, f_in = x_p.shape
    f_out_pad = w_p.shape[1]
    out_itemsize = jnp.dtype(out_dtype).itemsize
    return pl.pallas_call(
        _proj_kernel,
        out_shape=jax.ShapeDtypeStruct((n_pad, f_out_pad), out_dtype),
        grid_spec=pltpu.PrefetchScalarGridSpec(
            num_scalar_prefetch=0,
            grid=(n_pad // tm,),
            in_specs=[
                pl.BlockSpec((tm, f_in), lambda i: (i, 0)),        # x row tile
                pl.BlockSpec((f_in, f_out_pad), lambda i: (0, 0)),  # W (full)
            ],
            out_specs=pl.BlockSpec((tm, f_out_pad), lambda i: (i, 0)),
        ),
        compiler_params=pltpu.CompilerParams(
            dimension_semantics=("parallel",),
        ),
        cost_estimate=pl.CostEstimate(
            flops=2 * n_pad * f_in * f_out_pad,
            transcendentals=0,
            bytes_accessed=int(
                x_p.size * x_p.dtype.itemsize
                + w_p.size * w_p.dtype.itemsize
                + n_pad * f_out_pad * out_itemsize
            ),
        ),
    )(x_p, w_p)


# ---------------------------------------------------------------------------
# Kernel 2: aggregation  out = relu(adj @ xw)   (O(N^2*F_out) -- dominant,
#           HBM-bound on the N^2 adjacency stream)
# ---------------------------------------------------------------------------
def _agg_kernel(adj_ref, xw_ref, o_ref, *, xw_resident, tk):
    k = pl.program_id(1)
    if xw_resident:
        row0 = pl.multiple_of(k * tk, 128)
        xw_blk = xw_ref[pl.ds(row0, tk), :]
    else:
        xw_blk = xw_ref[...]

    part = jnp.dot(adj_ref[...], xw_blk, preferred_element_type=jnp.float32)

    @pl.when(k == 0)
    def _():
        o_ref[...] = part                      # init with first partial

    @pl.when(k > 0)
    def _():
        o_ref[...] = o_ref[...] + part         # accumulate in resident out blk

    @pl.when(k == pl.num_programs(1) - 1)
    def _():
        o_ref[...] = jnp.maximum(o_ref[...], 0.0)   # relu in place


@partial(jax.jit, static_argnames=("tm", "tk", "compute_dtype"))
def graph_convolution(x, adj, weight, *, tm=512, tk=1024,
                      compute_dtype=jnp.bfloat16):
    """relu(adj @ (x @ weight)) -- GCN layer forward (dropout p=0 identity).

    compute_dtype: dtype of the adj / xw operands of the dominant matmul
      (f32 accumulation regardless). bf16 default: the kernel is HBM-bound on
      the N^2 adjacency stream, so halving its bytes ~doubles throughput;
      expected relative error <~ 1e-2. Pass jnp.float32 for exact semantics.
    """
    n, f_in = x.shape
    f_out = weight.shape[1]
    assert adj.shape == (n, n)
    assert weight.shape[0] == f_in

    out_dtype = x.dtype
    op_dtype = jnp.dtype(compute_dtype)
    op_bytes = op_dtype.itemsize

    tm, tk, n_pad = _choose_tiles(n, tm, tk)
    f_out_pad = _round_up(f_out, 128)          # lane-dense output stores

    # --- pad / cast (cast first so the pad pass touches half the bytes;
    #     under jit XLA fuses convert+pad into one HBM pass) -----------------
    x_p = jnp.pad(x, ((0, n_pad - n), (0, 0))) if n_pad != n else x
    w_p = (jnp.pad(weight, ((0, 0), (0, f_out_pad - f_out)))
           if f_out_pad != f_out else weight)
    adj_c = adj if adj.dtype == op_dtype else adj.astype(op_dtype)
    adj_p = (jnp.pad(adj_c, ((0, n_pad - n), (0, n_pad - n)))
             if n_pad != n else adj_c)

    # --- projection (hoisted out of the aggregation grid) -------------------
    xw = _project(x_p, w_p, tm=tm, out_dtype=op_dtype)

    # --- aggregation ---------------------------------------------------------
    vmem_cap = _vmem_capacity_bytes()
    out_bytes = 4                              # f32 accumulate-in-place output
    xw_bytes = n_pad * f_out_pad * op_bytes
    # Keep the whole xw VMEM-resident (single DMA) when it comfortably fits;
    # otherwise stream (tk, f_out_pad) tiles (re-read once per row tile).
    xw_resident = 2 * xw_bytes <= min(8 << 20, vmem_cap // 6)

    if xw_resident:
        xw_spec = pl.BlockSpec((n_pad, f_out_pad), lambda i, k: (0, 0))
        xw_vmem = 2 * xw_bytes
        xw_hbm = xw_bytes
    else:
        xw_spec = pl.BlockSpec((tk, f_out_pad), lambda i, k: (k, 0))
        xw_vmem = 2 * tk * f_out_pad * op_bytes
        xw_hbm = (n_pad // tm) * xw_bytes

    vmem_est = (2 * tm * tk * op_bytes          # adj tiles (double-buffered)
                + xw_vmem                       # xw (resident or tiles)
                + 2 * tm * f_out_pad * out_bytes  # resident/accum out tiles
                + (4 << 20))                    # headroom
    vmem_limit = int(min(max(vmem_est, 16 << 20), (vmem_cap * 3) // 4))

    kernel = partial(_agg_kernel, xw_resident=xw_resident, tk=tk)
    out = pl.pallas_call(
        kernel,
        out_shape=jax.ShapeDtypeStruct((n_pad, f_out_pad), jnp.float32),
        grid_spec=pltpu.PrefetchScalarGridSpec(
            num_scalar_prefetch=0,
            grid=(n_pad // tm, n_pad // tk),
            in_specs=[
                pl.BlockSpec((tm, tk), lambda i, k: (i, k)),   # adj tile
                xw_spec,                                       # xw
            ],
            out_specs=pl.BlockSpec((tm, f_out_pad), lambda i, k: (i, 0)),
        ),
        compiler_params=pltpu.CompilerParams(
            dimension_semantics=("parallel", "arbitrary"),
            vmem_limit_bytes=vmem_limit,
        ),
        cost_estimate=pl.CostEstimate(
            flops=2 * n_pad * n_pad * f_out_pad,
            transcendentals=0,
            bytes_accessed=int(n_pad * n_pad * op_bytes
                               + xw_hbm
                               + n_pad * f_out_pad * out_bytes),
        ),
    )(adj_p, xw)

    return out[:n, :f_out].astype(out_dtype)


def _make_inputs(key, n, f_in, f_out):
    k_x, k_a, k_w = jax.random.split(key, 3)
    x = jax.random.normal(k_x, (n, f_in), dtype=jnp.float32)
    # Symmetric row-normalized adjacency (GCN-style).
    a_raw = (jax.random.uniform(k_a, (n, n)) < 0.1).astype(jnp.float32)
    a_sym = jnp.maximum(a_raw, a_raw.T) + jnp.eye(n, dtype=jnp.float32)
    adj = a_sym / jnp.sum(a_sym, axis=1, keepdims=True)
    # Xavier-normal init (matches torch.nn.init.xavier_normal_).
    std = math.sqrt(2.0 / (f_in + f_out))
    w = std * jax.random.normal(k_w, (f_in, f_out), dtype=jnp.float32)
    return x, adj, w


if __name__ == "__main__":
    key = jax.random.PRNGKey(0)
    k1, k2 = jax.random.split(key)

    # --- test 1: exact f32 path, aligned shapes (N=128, 64 -> 32) -----------
    x, adj, w = _make_inputs(k1, 128, 64, 32)
    ref = jnp.maximum(adj @ (x @ w), 0.0)
    out_f32 = jax.block_until_ready(
        graph_convolution(x, adj, w, compute_dtype=jnp.float32))
    assert out_f32.shape == (128, 32)
    assert jnp.allclose(out_f32, ref, atol=1e-4, rtol=1e-4)

    # --- test 2: default bf16 operands for the dominant matmul (f32 acc) ----
    out_bf16 = jax.block_until_ready(graph_convolution(x, adj, w))
    assert out_bf16.shape == (128, 32)
    assert jnp.allclose(out_bf16, ref, atol=5e-2, rtol=5e-2)

    # --- test 3: ragged shapes -> padding, multi-row-tile grid --------------
    x2, adj2, w2 = _make_inputs(k2, 300, 48, 96)
    ref2 = jnp.maximum(adj2 @ (x2 @ w2), 0.0)
    out2 = jax.block_until_ready(graph_convolution(x2, adj2, w2))
    assert out2.shape == (300, 96)
    assert jnp.allclose(out2, ref2, atol=5e-2, rtol=5e-2)
    out2_f32 = jax.block_until_ready(
        graph_convolution(x2, adj2, w2, compute_dtype=jnp.float32))
    assert jnp.allclose(out2_f32, ref2, atol=1e-3, rtol=1e-3)

    print("KERNEL_OK")
</pallas_src>

<mosaic_0001>
module attributes {stable_mosaic.version = 11 : i64} {
  func.func @_proj_kernel(%arg0: i32, %arg1: memref<128x64xf32, #tpu.memory_space<vmem>>, %arg2: memref<64x128xf32, #tpu.memory_space<vmem>>, %arg3: memref<128x128xf32, #tpu.memory_space<vmem>>) attributes {dimension_semantics = [#tpu.dimension_semantics<parallel>], iteration_bounds = array<i64: 1>, scalar_prefetch = 0 : i64, scratch_operands = 0 : i64, tpu.core_type = #tpu.core_type<tc>, window_params = [{transform_indices = @transform_0, window_bounds = array<i64: 128, 64>}, {pipeline_mode = #tpu.pipeline_mode<synchronous>, transform_indices = @transform_1, window_bounds = array<i64: 64, 128>}, {transform_indices = @transform_2, window_bounds = array<i64: 128, 128>}]} {
    %c0 = arith.constant 0 : index
    %c0_0 = arith.constant 0 : index
    %0 = vector.load %arg1[%c0, %c0_0] : memref<128x64xf32, #tpu.memory_space<vmem>>, vector<128x64xf32>
    %c0_1 = arith.constant 0 : index
    %c0_2 = arith.constant 0 : index
    %1 = vector.load %arg2[%c0_1, %c0_2] : memref<64x128xf32, #tpu.memory_space<vmem>>, vector<64x128xf32>
    %cst = arith.constant dense<0.000000e+00> : vector<128x128xf32>
    %2 = tpu.matmul %0, %1, %cst {dimension_numbers = #tpu.dot_dimension_numbers<[1], [0], [0], [1], [0, 0, 1, 1], [], []>} : vector<128x64xf32>, vector<64x128xf32>, vector<128x128xf32> -> vector<128x128xf32>
    %c0_3 = arith.constant 0 : index
    %c0_4 = arith.constant 0 : index
    %3 = vector.load %arg3[%c0_3, %c0_4] : memref<128x128xf32, #tpu.memory_space<vmem>>, vector<128x128xf32>
    tpu.vector_store %arg3[%c0_3, %c0_4], %2 {strides = array<i32>} : memref<128x128xf32, #tpu.memory_space<vmem>>, vector<128x128xf32>,
    return
  }
  func.func @transform_0(%arg0: i32) -> (i32, i32) {
    %c0_i32 = arith.constant 0 : i32
    %c0_i32_0 = arith.constant 0 : i32
    return %arg0, %c0_i32 : i32, i32
  }
  func.func @transform_1(%arg0: i32) -> (i32, i32) {
    %c0_i32 = arith.constant 0 : i32
    %c0_i32_0 = arith.constant 0 : i32
    %c0_i32_1 = arith.constant 0 : i32
    return %c0_i32, %c0_i32_0 : i32, i32
  }
  func.func @transform_2(%arg0: i32) -> (i32, i32) {
    %c0_i32 = arith.constant 0 : i32
    %c0_i32_0 = arith.constant 0 : i32
    return %arg0, %c0_i32 : i32, i32
  }
}

module attributes {stable_mosaic.version = 11 : i64} {
  func.func @_agg_kernel(%arg0: i32, %arg1: i32, %arg2: memref<128x128xf32, #tpu.memory_space<vmem>>, %arg3: memref<128x128xf32, #tpu.memory_space<vmem>>, %arg4: memref<128x128xf32, #tpu.memory_space<vmem>>) attributes {dimension_semantics = [#tpu.dimension_semantics<parallel>, #tpu.dimension_semantics<arbitrary>], iteration_bounds = array<i64: 1, 1>, scalar_prefetch = 0 : i64, scratch_operands = 0 : i64, tpu.core_type = #tpu.core_type<tc>, window_params = [{transform_indices = @transform_0, window_bounds = array<i64: 128, 128>}, {pipeline_mode = #tpu.pipeline_mode<synchronous>, transform_indices = @transform_1, window_bounds = array<i64: 128, 128>}, {transform_indices = @transform_2, window_bounds = array<i64: 128, 128>}]} {
    %c128_i32 = arith.constant 128 : i32
    %0 = arith.muli %arg1, %c128_i32 : i32
    %1 = tpu.assume_multiple %0, 128 : i32
    %2 = arith.index_cast %1 : i32 to index
    %c0 = arith.constant 0 : index
    %3 = vector.load %arg3[%2, %c0] : memref<128x128xf32, #tpu.memory_space<vmem>>, vector<128x128xf32>
    %c0_0 = arith.constant 0 : index
    %c0_1 = arith.constant 0 : index
    %4 = vector.load %arg2[%c0_0, %c0_1] : memref<128x128xf32, #tpu.memory_space<vmem>>, vector<128x128xf32>
    %cst = arith.constant dense<0.000000e+00> : vector<128x128xf32>
    %5 = tpu.matmul %4, %3, %cst {dimension_numbers = #tpu.dot_dimension_numbers<[1], [0], [0], [1], [0, 0, 1, 1], [], []>} : vector<128x128xf32>, vector<128x128xf32>, vector<128x128xf32> -> vector<128x128xf32>
    %c0_i32 = arith.constant 0 : i32
    %6 = arith.cmpi eq, %arg1, %c0_i32 : i32
    %7 = arith.extui %6 : i1 to i32
    %c0_i32_2 = arith.constant 0 : i32
    %8 = arith.cmpi ne, %7, %c0_i32_2 : i32
    scf.if %8 {
      %c0_7 = arith.constant 0 : index
      %c0_8 = arith.constant 0 : index
      %15 = vector.load %arg4[%c0_7, %c0_8] : memref<128x128xf32, #tpu.memory_space<vmem>>, vector<128x128xf32>
      tpu.vector_store %arg4[%c0_7, %c0_8], %5 {strides = array<i32>} : memref<128x128xf32, #tpu.memory_space<vmem>>, vector<128x128xf32>,
    } else {
    }
    %c0_i32_3 = arith.constant 0 : i32
    %9 = arith.cmpi sgt, %arg1, %c0_i32_3 : i32
    %10 = arith.extui %9 : i1 to i32
    %c0_i32_4 = arith.constant 0 : i32
    %11 = arith.cmpi ne, %10, %c0_i32_4 : i32
    scf.if %11 {
      %c0_7 = arith.constant 0 : index
      %c0_8 = arith.constant 0 : index
      %15 = vector.load %arg4[%c0_7, %c0_8] : memref<128x128xf32, #tpu.memory_space<vmem>>, vector<128x128xf32>
      %16 = arith.addf %15, %5 : vector<128x128xf32>
      %c0_9 = arith.constant 0 : index
      %c0_10 = arith.constant 0 : index
      %17 = vector.load %arg4[%c0_9, %c0_10] : memref<128x128xf32, #tpu.memory_space<vmem>>, vector<128x128xf32>
      tpu.vector_store %arg4[%c0_9, %c0_10], %16 {strides = array<i32>} : memref<128x128xf32, #tpu.memory_space<vmem>>, vector<128x128xf32>,
    } else {
    }
    %c0_i32_5 = arith.constant 0 : i32
    %12 = arith.cmpi eq, %arg1, %c0_i32_5 : i32
    %13 = arith.extui %12 : i1 to i32
    %c0_i32_6 = arith.constant 0 : i32
    %14 = arith.cmpi ne, %13, %c0_i32_6 : i32
    scf.if %14 {
      %c0_7 = arith.constant 0 : index
      %c0_8 = arith.constant 0 : index
      %15 = vector.load %arg4[%c0_7, %c0_8] : memref<128x128xf32, #tpu.memory_space<vmem>>, vector<128x128xf32>
      %cst_9 = arith.constant 0.000000e+00 : f32
      %16 = vector.broadcast %cst_9 : f32 to vector<128x128xf32>
      %17 = arith.maximumf %15, %16 : vector<128x128xf32>
      %c0_10 = arith.constant 0 : index
      %c0_11 = arith.constant 0 : index
      %18 = vector.load %arg4[%c0_10, %c0_11] : memref<128x128xf32, #tpu.memory_space<vmem>>, vector<128x128xf32>
      tpu.vector_store %arg4[%c0_10, %c0_11], %17 {strides = array<i32>} : memref<128x128xf32, #tpu.memory_space<vmem>>, vector<128x128xf32>,
    } else {
    }
    return
  }
  func.func @transform_0(%arg0: i32, %arg1: i32) -> (i32, i32) {
    %c0_i32 = arith.constant 0 : i32
    return %arg0, %arg1 : i32, i32
  }
  func.func @transform_1(%arg0: i32, %arg1: i32) -> (i32, i32) {
    %c0_i32 = arith.constant 0 : i32
    %c0_i32_0 = arith.constant 0 : i32
    %c0_i32_1 = arith.constant 0 : i32
    return %c0_i32, %c0_i32_0 : i32, i32
  }
  func.func @transform_2(%arg0: i32, %arg1: i32) -> (i32, i32) {
    %c0_i32 = arith.constant 0 : i32
    %c0_i32_0 = arith.constant 0 : i32
    return %arg0, %c0_i32 : i32, i32
  }
}

</mosaic_0001>

<bundles_post_ra>
// kernel: graph_convolution.2
= control target key start
LH: loop header
LB: loop body
LE: loop exit
PB: predicated region body
PF: predicated region fallthrough
CT: control target
= control target key end

     0   :  { %vm35_vm0 = vcmask 523264   ;;  %s496_s1 = inlined_call_operand.vmem [shape: f32[64,128], index: 1, kind: input, shape index: {}]   ;;  %s497_s0 = inlined_call_operand.vmem [shape: f32[128,64], index: 0, kind: input, shape index: {}]   ;;  %s498_s2 = inlined_call_operand.vmem [shape: f32[128,128], index: 2, kind: output, shape index: {}]  }
   0x1   :  { %v34_v0 = vld [vmem:[%s496_s1 + $0x38] sm:$0xff]  ;;  %v33_v1 = vld [vmem:[%s496_s1 + $0x30] sm:$0xff]  ;;  %v32_v2 = vld [vmem:[%s496_s1 + $0x28] sm:$0xff] }
   0x2   :  { %289 = vmatprep.subr.mxu0 %v34_v0  ;;  %329 = vmatprep.subr.mxu1 %v34_v0  ;;  %v31_v3 = vld [vmem:[%s496_s1 + $0x20] sm:$0xff]  ;;  %v30_v4 = vld [vmem:[%s496_s1 + $0x18] sm:$0xff]  ;;  %v29_v5 = vld [vmem:[%s496_s1 + $0x10] sm:$0xff] }
   0x3   :  { %290 = vmatpush3.msra.mxu0 %v34_v0  ;;  %337 = vmatpush3.msra.mxu1 %v34_v0  ;;  %v28_v6 = vld [vmem:[%s496_s1 + $0x8] sm:$0xff]  ;;  %v27_v7 = vld [vmem:[%s496_s1] sm:$0xff]  ;;  %v13_v12 = vld [vmem:[%s497_s0 + $0x10] sm:$0xff] }
   0x4   :  { %291 = vmatprep.subr.mxu0 %v33_v1  ;;  %330 = vmatprep.subr.mxu1 %v33_v1  ;;  %v11_v8 = vld [vmem:[%s497_s0] sm:$0xff]  ;;  %v12_v10 = vld [vmem:[%s497_s0 + $0x8] sm:$0xff]  ;;  %v21_v13 = vld [vmem:[%s497_s0 + $0x50] sm:$0xff] }
   0x5   :  { %292 = vmatpush3.msra.mxu0 %v33_v1  ;;  %338 = vmatpush3.msra.mxu1 %v33_v1  ;;  %v19_v9 = vld [vmem:[%s497_s0 + $0x40] sm:$0xff]  ;;  %v20_v11 = vld [vmem:[%s497_s0 + $0x48] sm:$0xff]  ;;  %v14_v14 = vld [vmem:[%s497_s0 + $0x18] sm:$0xff] }
   0x6   :  { %293 = vmatprep.subr.mxu0 %v32_v2  ;;  %331 = vmatprep.subr.mxu1 %v32_v2  ;;  %v22_v15 = vld [vmem:[%s497_s0 + $0x58] sm:$0xff]  ;;  %v15_v16 = vld [vmem:[%s497_s0 + $0x20] sm:$0xff]  ;;  %v16_v18 = vld [vmem:[%s497_s0 + $0x28] sm:$0xff] }
   0x7   :  { %294 = vmatpush3.msra.mxu0 %v32_v2  ;;  %339 = vmatpush3.msra.mxu1 %v32_v2  ;;  %v23_v17 = vld [vmem:[%s497_s0 + $0x60] sm:$0xff]  ;;  %v24_v19 = vld [vmem:[%s497_s0 + $0x68] sm:$0xff]  ;;  %v17_v20 = vld [vmem:[%s497_s0 + $0x30] sm:$0xff] }
   0x8   :  { %295 = vmatprep.subr.mxu0 %v31_v3  ;;  %332 = vmatprep.subr.mxu1 %v31_v3  ;;  %v25_v21 = vld [vmem:[%s497_s0 + $0x70] sm:$0xff]  ;;  %v18_v22 = vld [vmem:[%s497_s0 + $0x38] sm:$0xff] }
   0x9   :  { %296 = vmatpush3.msra.mxu0 %v31_v3  ;;  %340 = vmatpush3.msra.mxu1 %v31_v3  ;;  %v26_v23 = vld [vmem:[%s497_s0 + $0x78] sm:$0xff] }
   0xa   :  { %297 = vmatprep.subr.mxu0 %v30_v4  ;;  %333 = vmatprep.subr.mxu1 %v30_v4 }
   0xb   :  { %298 = vmatpush3.msra.mxu0 %v30_v4  ;;  %341 = vmatpush3.msra.mxu1 %v30_v4 }
   0xc   :  { %299 = vmatprep.subr.mxu0 %v29_v5  ;;  %334 = vmatprep.subr.mxu1 %v29_v5 }
   0xd   :  { %300 = vmatpush3.msra.mxu0 %v29_v5  ;;  %342 = vmatpush3.msra.mxu1 %v29_v5 }
   0xe   :  { %301 = vmatprep.subr.mxu0 %v28_v6  ;;  %335 = vmatprep.subr.mxu1 %v28_v6 }
   0xf   :  { %302 = vmatpush3.msra.mxu0 %v28_v6  ;;  %343 = vmatpush3.msra.mxu1 %v28_v6 }
  0x10   :  { %303 = vmatprep.subr.mxu0 %v27_v7  ;;  %336 = vmatprep.subr.mxu1 %v27_v7 }
  0x11   :  { %304 = vmatpush3.msra.mxu0 %v27_v7  ;;  %344 = vmatpush3.msra.mxu1 %v27_v7 }
  0x12   :  { %305 = vmatprep.mubr.msk.f32.mxu0 %vm35_vm0, %v11_v8  ;;  %317 = vmatprep.mubr.msk.f32.mxu1 %vm35_vm0, %v19_v9 }
  0x13   :  { %306 = vmatmul.mubr.msk.f32.vlgmr.msra.gmra.mxu0 %vm35_vm0, %v12_v10  ;;  %318 = vmatmul.mubr.msk.f32.vlgmr.msra.gmra.mxu1 %vm35_vm0, %v20_v11 }
  0x14   :  { %308 = vmatprep.mubr.msk.f32.mxu0 %vm35_vm0, %v13_v12  ;;  %320 = vmatprep.mubr.msk.f32.mxu1 %vm35_vm0, %v21_v13 }
  0x17   :  { %309 = vmatmul.mubr.msk.f32.gmra.mxu0 %vm35_vm0, %v14_v14  ;;  %321 = vmatmul.mubr.msk.f32.gmra.mxu1 %vm35_vm0, %v22_v15 }
  0x18   :  { %311 = vmatprep.mubr.msk.f32.mxu0 %vm35_vm0, %v15_v16  ;;  %323 = vmatprep.mubr.msk.f32.mxu1 %vm35_vm0, %v23_v17 }
  0x1b   :  { %312 = vmatmul.mubr.msk.f32.gmra.mxu0 %vm35_vm0, %v16_v18  ;;  %324 = vmatmul.mubr.msk.f32.gmra.mxu1 %vm35_vm0, %v24_v19 }
  0x1c   :  { %314 = vmatprep.mubr.msk.f32.mxu0 %vm35_vm0, %v17_v20  ;;  %326 = vmatprep.mubr.msk.f32.mxu1 %vm35_vm0, %v25_v21 }
  0x1f   :  { %315 = vmatmul.mubr.msk.f32.gmra.mxu0 %vm35_vm0, %v18_v22  ;;  %327 = vmatmul.mubr.msk.f32.gmra.mxu1 %vm35_vm0, %v26_v23 }
  0xd3   :  { %v307_v24 = vpop.f32.mrf.mxu0  ;;  %v319_v25 = vpop.f32.mrf.mxu1 }
  0xd4   :  { %230 = vst [vmem:[%s498_s2 + $0x8] sm:$0xff] %v307_v24  ;;  %238 = vst [vmem:[%s498_s2 + $0x48] sm:$0xff] %v319_v25 }
  0xd5   :  { %v150_v26 = vpop.f32.mrf.mxu0  ;;  %v190_v27 = vpop.f32.mrf.mxu1 }
  0xd6   :  { %229 = vst [vmem:[%s498_s2] sm:$0xff] %v150_v26  ;;  %237 = vst [vmem:[%s498_s2 + $0x40] sm:$0xff] %v190_v27 }
  0xd7   :  { %v310_v28 = vpop.f32.mrf.mxu0  ;;  %v322_v29 = vpop.f32.mrf.mxu1 }
  0xd8   :  { %232 = vst [vmem:[%s498_s2 + $0x18] sm:$0xff] %v310_v28  ;;  %240 = vst [vmem:[%s498_s2 + $0x58] sm:$0xff] %v322_v29 }
  0xd9   :  { %v160_v30 = vpop.f32.mrf.mxu0  ;;  %v200_v31 = vpop.f32.mrf.mxu1 }
  0xda   :  { %231 = vst [vmem:[%s498_s2 + $0x10] sm:$0xff] %v160_v30  ;;  %239 = vst [vmem:[%s498_s2 + $0x50] sm:$0xff] %v200_v31 }
  0xdb   :  { %v313_v32 = vpop.f32.mrf.mxu0  ;;  %v325_v33 = vpop.f32.mrf.mxu1 }
  0xdc   :  { %234 = vst [vmem:[%s498_s2 + $0x28] sm:$0xff] %v313_v32  ;;  %242 = vst [vmem:[%s498_s2 + $0x68] sm:$0xff] %v325_v33 }
  0xdd   :  { %v170_v34 = vpop.f32.mrf.mxu0  ;;  %v210_v35 = vpop.f32.mrf.mxu1 }
  0xde   :  { %233 = vst [vmem:[%s498_s2 + $0x20] sm:$0xff] %v170_v34  ;;  %241 = vst [vmem:[%s498_s2 + $0x60] sm:$0xff] %v210_v35 }
  0xdf   :  { %v316_v36 = vpop.f32.mrf.mxu0  ;;  %v328_v37 = vpop.f32.mrf.mxu1 }
  0xe0   :  { %236 = vst [vmem:[%s498_s2 + $0x38] sm:$0xff] %v316_v36  ;;  %244 = vst [vmem:[%s498_s2 + $0x78] sm:$0xff] %v328_v37 }
  0xe1   :  { %v180_v38 = vpop.f32.mrf.mxu0  ;;  %v220_v39 = vpop.f32.mrf.mxu1 }
  0xe2   :  { %235 = vst [vmem:[%s498_s2 + $0x30] sm:$0xff] %v180_v38  ;;  %243 = vst [vmem:[%s498_s2 + $0x70] sm:$0xff] %v220_v39 }

// kernel: graph_convolution.3
= control target key start
LH: loop header
LB: loop body
LE: loop exit
PB: predicated region body
PF: predicated region fallthrough
CT: control target
= control target key end

     0   :  { %s596_s1 = inlined_call_operand.vmem [shape: f32[128,128], index: 1, kind: input, shape index: {}]   ;;  %s597_s0 = inlined_call_operand.vmem [shape: f32[128,128], index: 0, kind: input, shape index: {}]   ;;  %s598_s2 = inlined_call_operand.vmem [shape: f32[128,128], index: 2, kind: output, shape index: {}]  }
   0x1   :  { %v28_v0 = vld [vmem:[%s596_s1 + $0x78] sm:$0xff]  ;;  %v27_v1 = vld [vmem:[%s596_s1 + $0x70] sm:$0xff]  ;;  %v26_v2 = vld [vmem:[%s596_s1 + $0x68] sm:$0xff] }
   0x2   :  { %349 = vmatprep.subr.mxu0 %v28_v0  ;;  %405 = vmatprep.subr.mxu1 %v28_v0  ;;  %v25_v3 = vld [vmem:[%s596_s1 + $0x60] sm:$0xff]  ;;  %v24_v4 = vld [vmem:[%s596_s1 + $0x58] sm:$0xff]  ;;  %v23_v5 = vld [vmem:[%s596_s1 + $0x50] sm:$0xff] }
   0x3   :  { %350 = vmatpush3.msra.mxu0 %v28_v0  ;;  %421 = vmatpush3.msra.mxu1 %v28_v0  ;;  %v22_v6 = vld [vmem:[%s596_s1 + $0x48] sm:$0xff]  ;;  %v21_v7 = vld [vmem:[%s596_s1 + $0x40] sm:$0xff]  ;;  %v20_v8 = vld [vmem:[%s596_s1 + $0x38] sm:$0xff] }
   0x4   :  { %351 = vmatprep.subr.mxu0 %v27_v1  ;;  %406 = vmatprep.subr.mxu1 %v27_v1  ;;  %v19_v9 = vld [vmem:[%s596_s1 + $0x30] sm:$0xff]  ;;  %v18_v10 = vld [vmem:[%s596_s1 + $0x28] sm:$0xff]  ;;  %v17_v11 = vld [vmem:[%s596_s1 + $0x20] sm:$0xff] }
   0x5   :  { %352 = vmatpush3.msra.mxu0 %v27_v1  ;;  %422 = vmatpush3.msra.mxu1 %v27_v1  ;;  %v16_v12 = vld [vmem:[%s596_s1 + $0x18] sm:$0xff]  ;;  %v15_v13 = vld [vmem:[%s596_s1 + $0x10] sm:$0xff]  ;;  %v14_v14 = vld [vmem:[%s596_s1 + $0x8] sm:$0xff] }
   0x6   :  { %353 = vmatprep.subr.mxu0 %v26_v2  ;;  %407 = vmatprep.subr.mxu1 %v26_v2  ;;  %v13_v15 = vld [vmem:[%s596_s1] sm:$0xff]  ;;  %v30_v18 = vld [vmem:[%s597_s0 + $0x8] sm:$0xff]  ;;  %v31_v20 = vld [vmem:[%s597_s0 + $0x10] sm:$0xff] }
   0x7   :  { %354 = vmatpush3.msra.mxu0 %v26_v2  ;;  %423 = vmatpush3.msra.mxu1 %v26_v2  ;;  %v29_v16 = vld [vmem:[%s597_s0] sm:$0xff]  ;;  %v38_v19 = vld [vmem:[%s597_s0 + $0x48] sm:$0xff]  ;;  %v39_v21 = vld [vmem:[%s597_s0 + $0x50] sm:$0xff] }
   0x8   :  { %355 = vmatprep.subr.mxu0 %v25_v3  ;;  %408 = vmatprep.subr.mxu1 %v25_v3  ;;  %v37_v17 = vld [vmem:[%s597_s0 + $0x40] sm:$0xff]  ;;  %v32_v22 = vld [vmem:[%s597_s0 + $0x18] sm:$0xff]  ;;  %v34_v26 = vld [vmem:[%s597_s0 + $0x28] sm:$0xff] }
   0x9   :  { %356 = vmatpush3.msra.mxu0 %v25_v3  ;;  %424 = vmatpush3.msra.mxu1 %v25_v3  ;;  %v40_v23 = vld [vmem:[%s597_s0 + $0x58] sm:$0xff]  ;;  %v33_v24 = vld [vmem:[%s597_s0 + $0x20] sm:$0xff]  ;;  %v42_v27 = vld [vmem:[%s597_s0 + $0x68] sm:$0xff] }
   0xa   :  { %357 = vmatprep.subr.mxu0 %v24_v4  ;;  %409 = vmatprep.subr.mxu1 %v24_v4  ;;  %v41_v25 = vld [vmem:[%s597_s0 + $0x60] sm:$0xff]  ;;  %v35_v28 = vld [vmem:[%s597_s0 + $0x30] sm:$0xff]  ;;  %v36_v30 = vld [vmem:[%s597_s0 + $0x38] sm:$0xff] }
   0xb   :  { %358 = vmatpush3.msra.mxu0 %v24_v4  ;;  %425 = vmatpush3.msra.mxu1 %v24_v4  ;;  %v43_v29 = vld [vmem:[%s597_s0 + $0x70] sm:$0xff]  ;;  %v44_v31 = vld [vmem:[%s597_s0 + $0x78] sm:$0xff] }
   0xc   :  { %359 = vmatprep.subr.mxu0 %v23_v5  ;;  %410 = vmatprep.subr.mxu1 %v23_v5 }
   0xd   :  { %360 = vmatpush3.msra.mxu0 %v23_v5  ;;  %426 = vmatpush3.msra.mxu1 %v23_v5 }
   0xe   :  { %361 = vmatprep.subr.mxu0 %v22_v6  ;;  %411 = vmatprep.subr.mxu1 %v22_v6 }
   0xf   :  { %362 = vmatpush3.msra.mxu0 %v22_v6  ;;  %427 = vmatpush3.msra.mxu1 %v22_v6 }
  0x10   :  { %363 = vmatprep.subr.mxu0 %v21_v7  ;;  %412 = vmatprep.subr.mxu1 %v21_v7 }
  0x11   :  { %364 = vmatpush3.msra.mxu0 %v21_v7  ;;  %428 = vmatpush3.msra.mxu1 %v21_v7 }
  0x12   :  { %365 = vmatprep.subr.mxu0 %v20_v8  ;;  %413 = vmatprep.subr.mxu1 %v20_v8 }
  0x13   :  { %366 = vmatpush3.msra.mxu0 %v20_v8  ;;  %429 = vmatpush3.msra.mxu1 %v20_v8 }
  0x14   :  { %367 = vmatprep.subr.mxu0 %v19_v9  ;;  %414 = vmatprep.subr.mxu1 %v19_v9 }
  0x15   :  { %368 = vmatpush3.msra.mxu0 %v19_v9  ;;  %430 = vmatpush3.msra.mxu1 %v19_v9 }
  0x16   :  { %369 = vmatprep.subr.mxu0 %v18_v10  ;;  %415 = vmatprep.subr.mxu1 %v18_v10 }
  0x17   :  { %370 = vmatpush3.msra.mxu0 %v18_v10  ;;  %431 = vmatpush3.msra.mxu1 %v18_v10 }
  0x18   :  { %371 = vmatprep.subr.mxu0 %v17_v11  ;;  %416 = vmatprep.subr.mxu1 %v17_v11 }
  0x19   :  { %372 = vmatpush3.msra.mxu0 %v17_v11  ;;  %432 = vmatpush3.msra.mxu1 %v17_v11 }
  0x1a   :  { %373 = vmatprep.subr.mxu0 %v16_v12  ;;  %417 = vmatprep.subr.mxu1 %v16_v12 }
  0x1b   :  { %374 = vmatpush3.msra.mxu0 %v16_v12  ;;  %433 = vmatpush3.msra.mxu1 %v16_v12 }
  0x1c   :  { %375 = vmatprep.subr.mxu0 %v15_v13  ;;  %418 = vmatprep.subr.mxu1 %v15_v13 }
  0x1d   :  { %376 = vmatpush3.msra.mxu0 %v15_v13  ;;  %434 = vmatpush3.msra.mxu1 %v15_v13 }
  0x1e   :  { %377 = vmatprep.subr.mxu0 %v14_v14  ;;  %419 = vmatprep.subr.mxu1 %v14_v14 }
  0x1f   :  { %378 = vmatpush3.msra.mxu0 %v14_v14  ;;  %435 = vmatpush3.msra.mxu1 %v14_v14 }
  0x20   :  { %379 = vmatprep.subr.mxu0 %v13_v15  ;;  %420 = vmatprep.subr.mxu1 %v13_v15 }
  0x21   :  { %380 = vmatpush3.msra.mxu0 %v13_v15  ;;  %436 = vmatpush3.msra.mxu1 %v13_v15 }
  0x22   :  { %381 = vmatprep.mubr.f32.mxu0 %v29_v16  ;;  %393 = vmatprep.mubr.f32.mxu1 %v37_v17 }
  0x23   :  { %382 = vmatmul.mubr.f32.vlgmr.msra.gmra.mxu0 %v30_v18  ;;  %394 = vmatmul.mubr.f32.vlgmr.msra.gmra.mxu1 %v38_v19 }
  0x24   :  { %384 = vmatprep.mubr.f32.mxu0 %v31_v20  ;;  %396 = vmatprep.mubr.f32.mxu1 %v39_v21 }
  0x27   :  { %385 = vmatmul.mubr.f32.gmra.mxu0 %v32_v22  ;;  %397 = vmatmul.mubr.f32.gmra.mxu1 %v40_v23 }
  0x28   :  { %387 = vmatprep.mubr.f32.mxu0 %v33_v24  ;;  %399 = vmatprep.mubr.f32.mxu1 %v41_v25 }
  0x2b   :  { %388 = vmatmul.mubr.f32.gmra.mxu0 %v34_v26  ;;  %400 = vmatmul.mubr.f32.gmra.mxu1 %v42_v27 }
  0x2c   :  { %390 = vmatprep.mubr.f32.mxu0 %v35_v28  ;;  %402 = vmatprep.mubr.f32.mxu1 %v43_v29 }
  0x2f   :  { %391 = vmatmul.mubr.f32.gmra.mxu0 %v36_v30  ;;  %403 = vmatmul.mubr.f32.gmra.mxu1 %v44_v31 }
  0xe3   :  { %v383_v32 = vpop.f32.mrf.mxu0  ;;  %v395_v33 = vpop.f32.mrf.mxu1 }
  0xe4   :  { %v282_v34 = vmax.f32 %v383_v32, 0.0  ;;  %v290_v35 = vmax.f32 %v395_v33, 0.0 }
  0xe5   :  { %v111_v36 = vpop.f32.mrf.mxu0  ;;  %v151_v37 = vpop.f32.mrf.mxu1 }
  0xe6   :  { %298 = vst [vmem:[%s598_s2 + $0x8] sm:$0xff] %v282_v34  ;;  %306 = vst [vmem:[%s598_s2 + $0x48] sm:$0xff] %v290_v35  ;;  %v281_v38 = vmax.f32 %v111_v36, 0.0  ;;  %v289_v39 = vmax.f32 %v151_v37, 0.0 }
  0xe7   :  { %v386_v40 = vpop.f32.mrf.mxu0  ;;  %v398_v41 = vpop.f32.mrf.mxu1 }
  0xe8   :  { %297 = vst [vmem:[%s598_s2] sm:$0xff] %v281_v38  ;;  %305 = vst [vmem:[%s598_s2 + $0x40] sm:$0xff] %v289_v39  ;;  %v284_v42 = vmax.f32 %v386_v40, 0.0  ;;  %v292_v43 = vmax.f32 %v398_v41, 0.0 }
  0xe9   :  { %v121_v44 = vpop.f32.mrf.mxu0  ;;  %v161_v45 = vpop.f32.mrf.mxu1 }
  0xea   :  { %300 = vst [vmem:[%s598_s2 + $0x18] sm:$0xff] %v284_v42  ;;  %308 = vst [vmem:[%s598_s2 + $0x58] sm:$0xff] %v292_v43  ;;  %v283_v46 = vmax.f32 %v121_v44, 0.0  ;;  %v291_v47 = vmax.f32 %v161_v45, 0.0 }
  0xeb   :  { %v389_v48 = vpop.f32.mrf.mxu0  ;;  %v401_v49 = vpop.f32.mrf.mxu1 }
  0xec   :  { %299 = vst [vmem:[%s598_s2 + $0x10] sm:$0xff] %v283_v46  ;;  %307 = vst [vmem:[%s598_s2 + $0x50] sm:$0xff] %v291_v47  ;;  %v286_v50 = vmax.f32 %v389_v48, 0.0  ;;  %v294_v51 = vmax.f32 %v401_v49, 0.0 }
  0xed   :  { %v131_v52 = vpop.f32.mrf.mxu0  ;;  %v171_v53 = vpop.f32.mrf.mxu1 }
  0xee   :  { %302 = vst [vmem:[%s598_s2 + $0x28] sm:$0xff] %v286_v50  ;;  %310 = vst [vmem:[%s598_s2 + $0x68] sm:$0xff] %v294_v51  ;;  %v285_v54 = vmax.f32 %v131_v52, 0.0  ;;  %v293_v55 = vmax.f32 %v171_v53, 0.0 }
  0xef   :  { %v392_v56 = vpop.f32.mrf.mxu0  ;;  %v404_v57 = vpop.f32.mrf.mxu1 }
  0xf0   :  { %301 = vst [vmem:[%s598_s2 + $0x20] sm:$0xff] %v285_v54  ;;  %309 = vst [vmem:[%s598_s2 + $0x60] sm:$0xff] %v293_v55  ;;  %v288_v58 = vmax.f32 %v392_v56, 0.0  ;;  %v296_v59 = vmax.f32 %v404_v57, 0.0 }
  0xf1   :  { %v141_v60 = vpop.f32.mrf.mxu0  ;;  %v181_v61 = vpop.f32.mrf.mxu1 }
  0xf2   :  { %304 = vst [vmem:[%s598_s2 + $0x38] sm:$0xff] %v288_v58  ;;  %312 = vst [vmem:[%s598_s2 + $0x78] sm:$0xff] %v296_v59  ;;  %v287_v62 = vmax.f32 %v141_v60, 0.0  ;;  %v295_v63 = vmax.f32 %v181_v61, 0.0 }
  0xf4   :  { %303 = vst [vmem:[%s598_s2 + $0x30] sm:$0xff] %v287_v62  ;;  %311 = vst [vmem:[%s598_s2 + $0x70] sm:$0xff] %v295_v63 }

</bundles_post_ra>
